<compile_context>
chip_gen: v6e
topology: v6e:2x2x1
jax: 0.10.0
libtpu: 0.0.40
codegen_flags: <defaults>
</compile_context>

<pallas_src>
import math

import jax
import jax.numpy as jnp
from jax.experimental import pallas as pl
from jax.experimental.pallas import tpu as pltpu


def _round_up(x, m):
    return (x + m - 1) // m * m


# ---------------------------------------------------------------------------
# Fused PWFF kernel: y = tanh(x @ W1 + b1) @ W2 + b2   (one row-tile per step)
# ---------------------------------------------------------------------------
def _pwff_kernel(x_ref, w1_ref, b1_ref, w2_ref, b2_ref, o_ref):
    # (tm, Cin) @ (Cin, Cinner) -> f32 on the MXU
    h = jnp.dot(x_ref[...], w1_ref[...], preferred_element_type=jnp.float32)
    h = jnp.tanh(h + b1_ref[...])                    # bias + tanh fused (EUP)
    # (tm, Cinner) @ (Cinner, Cout) -> f32 on the MXU
    y = jnp.dot(h.astype(w2_ref.dtype), w2_ref[...],
                preferred_element_type=jnp.float32)
    o_ref[...] = (y + b2_ref[...]).astype(o_ref.dtype)


def pwff(x, w1, b1, w2, b2, *, tm_max=512):
    """x: (..., Cin); w1: (Cin, Cinner); b1: (Cinner,); w2: (Cinner, Cout);
    b2: (Cout,). Returns (..., Cout). Weights stay VMEM-resident; only the
    row dimension is tiled."""
    cin = x.shape[-1]
    cinner = w1.shape[1]
    cout = w2.shape[1]
    lead = x.shape[:-1]

    x2 = x.reshape(-1, cin)
    M = x2.shape[0]

    tm = min(tm_max, _round_up(M, 8))          # 8-aligned row tile
    grid_m = pl.cdiv(M, tm)                    # ragged edge handled by Pallas

    b1_2 = b1.reshape(1, cinner)
    b2_2 = b2.reshape(1, cout)

    out = pl.pallas_call(
        _pwff_kernel,
        out_shape=jax.ShapeDtypeStruct((M, cout), x.dtype),
        grid=(grid_m,),
        in_specs=[
            pl.BlockSpec((tm, cin), lambda i: (i, 0)),        # x row tile
            pl.BlockSpec((cin, cinner), lambda i: (0, 0)),    # W1 (resident)
            pl.BlockSpec((1, cinner), lambda i: (0, 0)),      # b1
            pl.BlockSpec((cinner, cout), lambda i: (0, 0)),   # W2 (resident)
            pl.BlockSpec((1, cout), lambda i: (0, 0)),        # b2
        ],
        out_specs=pl.BlockSpec((tm, cout), lambda i: (i, 0)),
        compiler_params=pltpu.CompilerParams(
            dimension_semantics=("parallel",)),
    )(x2, w1, b1_2, w2, b2_2)

    return out.reshape(*lead, cout)


# ---------------------------------------------------------------------------
# Parameter init mirroring torch.nn.Linear (uniform +/- 1/sqrt(fan_in)).
# Weights are stored transposed relative to PyTorch, i.e. (in, out), which is
# the layout the kernel consumes directly.
# ---------------------------------------------------------------------------
def init_pwff_params(key, in_chan, inner_chan, out_chan=None,
                     dtype=jnp.float32):
    if out_chan is None:
        out_chan = in_chan
    k1, k2, k3, k4 = jax.random.split(key, 4)
    bound1 = 1.0 / math.sqrt(in_chan)
    bound2 = 1.0 / math.sqrt(inner_chan)
    w1 = jax.random.uniform(k1, (in_chan, inner_chan), dtype, -bound1, bound1)
    b1 = jax.random.uniform(k2, (inner_chan,), dtype, -bound1, bound1)
    w2 = jax.random.uniform(k3, (inner_chan, out_chan), dtype, -bound2, bound2)
    b2 = jax.random.uniform(k4, (out_chan,), dtype, -bound2, bound2)
    return w1, b1, w2, b2


# ---------------------------------------------------------------------------
if __name__ == "__main__":
    key = jax.random.PRNGKey(0)
    pkey, xkey = jax.random.split(key)

    # Small shapes consistent with PWFF: batch=2, seq=8, in=32, inner=64,
    # out_chan defaults to in_chan (PyTorch: out_chan=None).
    batch, seq, in_chan, inner_chan = 2, 8, 32, 64

    w1, b1, w2, b2 = init_pwff_params(pkey, in_chan, inner_chan)
    x = jax.random.normal(xkey, (batch, seq, in_chan), dtype=jnp.float32)

    fwd = jax.jit(pwff)
    out = jax.block_until_ready(fwd(x, w1, b1, w2, b2))

    # Reference forward (plain JAX) to confirm semantics.
    ref = jnp.tanh(x @ w1 + b1) @ w2 + b2

    assert out.shape == (batch, seq, in_chan), out.shape
    assert out.dtype == jnp.float32
    assert jnp.allclose(out, ref, atol=2e-3, rtol=2e-3), \
        float(jnp.max(jnp.abs(out - ref)))
    print("KERNEL_OK")
</pallas_src>

<mosaic_0001>
module attributes {stable_mosaic.version = 11 : i64} {
  func.func @_pwff_kernel(%arg0: i32, %arg1: memref<16x32xf32, #tpu.memory_space<vmem>>, %arg2: memref<32x64xf32, #tpu.memory_space<vmem>>, %arg3: memref<1x64xf32, #tpu.memory_space<vmem>>, %arg4: memref<64x32xf32, #tpu.memory_space<vmem>>, %arg5: memref<1x32xf32, #tpu.memory_space<vmem>>, %arg6: memref<16x32xf32, #tpu.memory_space<vmem>>) attributes {dimension_semantics = [#tpu.dimension_semantics<parallel>], iteration_bounds = array<i64: 1>, scalar_prefetch = 0 : i64, scratch_operands = 0 : i64, tpu.core_type = #tpu.core_type<tc>, window_params = [{transform_indices = @transform_0, window_bounds = array<i64: 16, 32>}, {pipeline_mode = #tpu.pipeline_mode<synchronous>, transform_indices = @transform_1, window_bounds = array<i64: 32, 64>}, {pipeline_mode = #tpu.pipeline_mode<synchronous>, transform_indices = @transform_2, window_bounds = array<i64: 1, 64>}, {pipeline_mode = #tpu.pipeline_mode<synchronous>, transform_indices = @transform_3, window_bounds = array<i64: 64, 32>}, {pipeline_mode = #tpu.pipeline_mode<synchronous>, transform_indices = @transform_4, window_bounds = array<i64: 1, 32>}, {transform_indices = @transform_5, window_bounds = array<i64: 16, 32>}]} {
    %c0 = arith.constant 0 : index
    %c0_0 = arith.constant 0 : index
    %0 = vector.load %arg1[%c0, %c0_0] : memref<16x32xf32, #tpu.memory_space<vmem>>, vector<16x32xf32>
    %c0_1 = arith.constant 0 : index
    %c0_2 = arith.constant 0 : index
    %1 = vector.load %arg2[%c0_1, %c0_2] : memref<32x64xf32, #tpu.memory_space<vmem>>, vector<32x64xf32>
    %cst = arith.constant dense<0.000000e+00> : vector<16x64xf32>
    %2 = tpu.matmul %0, %1, %cst {dimension_numbers = #tpu.dot_dimension_numbers<[1], [0], [0], [1], [0, 0, 1, 1], [], []>} : vector<16x32xf32>, vector<32x64xf32>, vector<16x64xf32> -> vector<16x64xf32>
    %c0_3 = arith.constant 0 : index
    %c0_4 = arith.constant 0 : index
    %3 = vector.load %arg3[%c0_3, %c0_4] : memref<1x64xf32, #tpu.memory_space<vmem>>, vector<1x64xf32>
    %4 = vector.broadcast %3 : vector<1x64xf32> to vector<16x64xf32>
    %5 = arith.addf %2, %4 : vector<16x64xf32>
    %6 = math.tanh %5 : vector<16x64xf32>
    %c0_5 = arith.constant 0 : index
    %c0_6 = arith.constant 0 : index
    %7 = vector.load %arg4[%c0_5, %c0_6] : memref<64x32xf32, #tpu.memory_space<vmem>>, vector<64x32xf32>
    %cst_7 = arith.constant dense<0.000000e+00> : vector<16x32xf32>
    %8 = tpu.matmul %6, %7, %cst_7 {dimension_numbers = #tpu.dot_dimension_numbers<[1], [0], [0], [1], [0, 0, 1, 1], [], []>} : vector<16x64xf32>, vector<64x32xf32>, vector<16x32xf32> -> vector<16x32xf32>
    %c0_8 = arith.constant 0 : index
    %c0_9 = arith.constant 0 : index
    %9 = vector.load %arg5[%c0_8, %c0_9] : memref<1x32xf32, #tpu.memory_space<vmem>>, vector<1x32xf32>
    %10 = vector.broadcast %9 : vector<1x32xf32> to vector<16x32xf32>
    %11 = arith.addf %8, %10 : vector<16x32xf32>
    %c0_10 = arith.constant 0 : index
    %c0_11 = arith.constant 0 : index
    %12 = vector.load %arg6[%c0_10, %c0_11] : memref<16x32xf32, #tpu.memory_space<vmem>>, vector<16x32xf32>
    tpu.vector_store %arg6[%c0_10, %c0_11], %11 {strides = array<i32>} : memref<16x32xf32, #tpu.memory_space<vmem>>, vector<16x32xf32>,
    return
  }
  func.func @transform_0(%arg0: i32) -> (i32, i32) {
    %c0_i32 = arith.constant 0 : i32
    %c0_i32_0 = arith.constant 0 : i32
    return %arg0, %c0_i32 : i32, i32
  }
  func.func @transform_1(%arg0: i32) -> (i32, i32) {
    %c0_i32 = arith.constant 0 : i32
    %c0_i32_0 = arith.constant 0 : i32
    %c0_i32_1 = arith.constant 0 : i32
    return %c0_i32, %c0_i32_0 : i32, i32
  }
  func.func @transform_2(%arg0: i32) -> (i32, i32) {
    %c0_i32 = arith.constant 0 : i32
    %c0_i32_0 = arith.constant 0 : i32
    %c0_i32_1 = arith.constant 0 : i32
    return %c0_i32, %c0_i32_0 : i32, i32
  }
  func.func @transform_3(%arg0: i32) -> (i32, i32) {
    %c0_i32 = arith.constant 0 : i32
    %c0_i32_0 = arith.constant 0 : i32
    %c0_i32_1 = arith.constant 0 : i32
    return %c0_i32, %c0_i32_0 : i32, i32
  }
  func.func @transform_4(%arg0: i32) -> (i32, i32) {
    %c0_i32 = arith.constant 0 : i32
    %c0_i32_0 = arith.constant 0 : i32
    %c0_i32_1 = arith.constant 0 : i32
    return %c0_i32, %c0_i32_0 : i32, i32
  }
  func.func @transform_5(%arg0: i32) -> (i32, i32) {
    %c0_i32 = arith.constant 0 : i32
    %c0_i32_0 = arith.constant 0 : i32
    return %arg0, %c0_i32 : i32, i32
  }
}

</mosaic_0001>

<bundles_post_ra>
// kernel: pwff.1
= control target key start
LH: loop header
LB: loop body
LE: loop exit
PB: predicated region body
PF: predicated region fallthrough
CT: control target
= control target key end

     0   :  { %vm34_vm0 = vcmask 261120   ;;  %s402_s0 = inlined_call_operand.vmem [shape: f32[16,32], index: 0, kind: input, shape index: {}]   ;;  %s403_s1 = inlined_call_operand.vmem [shape: f32[32,64], index: 1, kind: input, shape index: {}]   ;;  %s404_s2 = inlined_call_operand.vmem [shape: f32[1,64], index: 2, kind: input, shape index: {}]   ;;  %s405_s3 = inlined_call_operand.vmem [shape: f32[64,32], index: 3, kind: input, shape index: {}]   ;;  %s406_s4 = inlined_call_operand.vmem [shape: f32[1,32], index: 4, kind: input, shape index: {}]   ;;  %s407_s5 = inlined_call_operand.hbm [shape: f32[16,32], index: 5, kind: output, shape index: {}]  }
   0x1   :  { %v26_v0 = vld [vmem:[%s403_s1 + $0x18] sm:$0xff]  ;;  %v25_v1 = vld [vmem:[%s403_s1 + $0x10] sm:$0xff]  ;;  %v21_v2 = vld [vmem:[%s402_s0] sm:$0xff] }
   0x2   :  { %255 = vmatprep.subr.mxu0 %v26_v0  ;;  %v24_v3 = vld [vmem:[%s403_s1 + $0x8] sm:$0xff]  ;;  %263 = vmatprep.mubr.msk.f32.mxu0 %vm34_vm0, %v21_v2 }
   0x3   :  { %256 = vmatpush3.msra.mxu0 %v26_v0 }
   0x4   :  { %10 = vsyncpa [#allocation3], 0  ;;  %257 = vmatprep.subr.mxu0 %v25_v1  ;;  %v23_v4 = vld [vmem:[%s403_s1] sm:$0xff]  ;;  %v22_v5 = vld [vmem:[%s402_s0 + $0x8] sm:$0xff]  ;;  %vm133_vm1 = vcmask 523264   ;;  %s314_s22 = smov [#allocation2]  }
   0x5   :  { %258 = vmatpush3.msra.mxu0 %v25_v1  ;;  %v125_v6 = vld [vmem:[%s405_s3 + $0x38] sm:$0xff]  ;;  %v124_v7 = vld [vmem:[%s405_s3 + $0x30] sm:$0xff]  ;;  %v123_v8 = vld [vmem:[%s405_s3 + $0x28] sm:$0xff]  ;;  %s222_s23 = sshll.u32 %s314_s22, 4  ;;  %s223_s23 = int_to_ptr.vmem [resolvable:$true] %s222_s23 }
   0x6   :  { %259 = vmatprep.subr.mxu0 %v24_v3  ;;  %266 = vmatprep.subr.mxu1 %v125_v6  ;;  %v122_v9 = vld [vmem:[%s405_s3 + $0x20] sm:$0xff]  ;;  %v121_v10 = vld [vmem:[%s405_s3 + $0x18] sm:$0xff]  ;;  %v120_v11 = vld [vmem:[%s405_s3 + $0x10] sm:$0xff]  ;;  %p297_p1 = scmp.lt.s32.totalorder %s223_s23, %s223_s23 }
   0x7   :  { %260 = vmatpush3.msra.mxu0 %v24_v3  ;;  %267 = vmatpush3.msra.mxu1 %v125_v6  ;;  %v119_v12 = vld [vmem:[%s405_s3 + $0x8] sm:$0xff]  ;;  %v118_v13 = vld [vmem:[%s405_s3] sm:$0xff] }
   0x8   :  { %261 = vmatprep.subr.mxu0 %v23_v4  ;;  %268 = vmatprep.subr.mxu1 %v124_v7  ;;  %v233_v14 = vld [vmem:[%s404_s2] ss:$0 sm:$0xff]  ;;  %s292_s2 = scalar_lea.vmem %s223_s23, 256 }
   0x9   :  { %262 = vmatpush3.msra.mxu0 %v23_v4  ;;  %269 = vmatpush3.msra.mxu1 %v124_v7  ;;  %v236_v21 = vld [vmem:[%s406_s4] ss:$0 sm:$0xff]  ;;  %p293_p0 = scmp.ne.s32.totalorder %s223_s23, %s292_s2  ;;  %p298_p2 = scmp.lt.s32.totalorder %s292_s2, %s292_s2 }
   0xa   :  { %264 = vmatmul.mubr.msk.f32.vlgmr.msra.gmra.mxu0 %vm34_vm0, %v22_v5  ;;  %270 = vmatprep.subr.mxu1 %v123_v8 }
   0xb   :  { %271 = vmatpush3.msra.mxu1 %v123_v8  ;;  %p299_p3 = por %p298_p2, %p297_p1 }
   0xc   :  { %272 = vmatprep.subr.mxu1 %v122_v9 }
   0xd   :  { %273 = vmatpush3.msra.mxu1 %v122_v9  ;;  %p300_p4 = pnand %p299_p3, %p293_p0 }
   0xe   :  { %274 = vmatprep.subr.mxu1 %v121_v10 }
   0xf   :  { %275 = vmatpush3.msra.mxu1 %v121_v10 }
  0x10   :  { %276 = vmatprep.subr.mxu1 %v120_v11 }
  0x11   :  { %277 = vmatpush3.msra.mxu1 %v120_v11 }
  0x12   :  { %278 = vmatprep.subr.mxu1 %v119_v12 }
  0x13   :  { %279 = vmatpush3.msra.mxu1 %v119_v12 }
  0x14   :  { %280 = vmatprep.subr.mxu1 %v118_v13 }
  0x15   :  { %281 = vmatpush3.msra.mxu1 %v118_v13 }
  0xca   :  { %v265_v15 = vpop.f32.mrf.mxu0 }
  0xcb   :  { %v113_v16 = vadd.f32 %v265_v15, %v233_v14 }
  0xcc   :  { %v107_v17 = vpop.f32.mrf.mxu0 }
  0xcd   :  { %v108_v18 = vadd.f32 %v233_v14, %v107_v17 }
  0xcf   :  { %288 = vtanh.f32 %v108_v18 }
  0xd0   :  { %290 = vtanh.f32 %v113_v16 }
  0xdc   :  { %v289_v19 = vpop.eup %288 }
  0xdd   :  { %v291_v20 = vpop.eup %290  ;;  %282 = vmatprep.mubr.msk.f32.mxu1 %vm133_vm1, %v289_v19 }
  0xde   :  { %283 = vmatmul.mubr.msk.f32.vlgmr.msra.gmra.mxu1 %vm133_vm1, %v291_v20 }
 0x19e   :  { %v284_v22 = vpop.f32.mrf.mxu1 }
 0x19f   :  { %v212_v23 = vadd.f32 %v284_v22, %v236_v21 }
 0x1a0   :  { %v206_v24 = vpop.f32.mrf.mxu1 }
 0x1a1   :  { %216 = vst.msk [vmem:[#allocation2 + $0x8] sm:$0xff] %vm34_vm0, %v212_v23  ;;  %v207_v25 = vadd.f32 %v236_v21, %v206_v24 }
 0x1a3   :  { %215 = vst.msk [vmem:[#allocation2] sm:$0xff] %vm34_vm0, %v207_v25 }
 0x1a4   :  { %303 = shalt.err (!%p300_p4)
}
 0x1a5   :  { %s315_s24 = smov 128   ;;  %s316_s4 = smov 8  }
 0x1a6   :  { %228 = dma.vmem_to_hbm [thread:$0]  %s223_s23, 256, %s407_s5, [#allocation3], %s315_s24, %s315_s24, %s316_s4  }
 0x1a7   :  { %312 = dma.done.wait [#allocation3], 256  }
 0x1a8   :  { %313 = vsyncadd [#allocation3], 4294967040 }
 0x1a9   :  { %232 = vsyncpa [#allocation3], 1 }

</bundles_post_ra>
